<compile_context>
chip_gen: v7x
topology: tpu7x:2x2x1
jax: 0.10.0
libtpu: 0.0.40
codegen_flags: <defaults>
</compile_context>

<pallas_src>
import functools

import jax
import jax.numpy as jnp
from jax import lax
from jax.experimental import pallas as pl
from jax.experimental.pallas import tpu as pltpu

_EPS_SQ = 1e-30          # added under rsqrt; sqrt(1e-30) == 1e-15 (geoopt-style eps)
_TANH_CLAMP = 15.0
_ARTANH_CLAMP = 1.0 - 1e-6
_TRG_BAND = 64           # exp(-|i-j|) < 1.6e-28 beyond this -> numerically zero in f32


def _artanh(x):
    x = jnp.clip(x, -_ARTANH_CLAMP, _ARTANH_CLAMP)
    return 0.5 * jnp.log((1.0 + x) / (1.0 - x))


def _round_up(a, m):
    return ((a + m - 1) // m) * m


# --------------------------- pass 1: per-row preamble ------------------------
def _preamble_kernel(x_ref, w1_ref, b1_ref, w2_ref, b2_ref,
                     xn_ref, h1_ref, h2_ref, *, matmul_dtype):
    mm = lambda a: a.astype(matmul_dtype)            # cast only MXU operands
    x = x_ref[...]                                   # (TM, D) f32 row tile
    ssq = jnp.sum(x * x, axis=-1, keepdims=True)
    inv_n = lax.rsqrt(ssq + _EPS_SQ)                 # EUP rsqrt, no divides
    xn = x * inv_n                                   # cosine-normalized rows
    x_tan = _artanh(ssq * inv_n) * xn                # logmap0(x), c = 1
    xn_ref[...] = xn
    h1_ref[...] = (jnp.dot(mm(x_tan), mm(w1_ref[...]),
                           preferred_element_type=jnp.float32) + b1_ref[...])
    h2_ref[...] = (jnp.dot(mm(x_tan), mm(w2_ref[...]),
                           preferred_element_type=jnp.float32) + b2_ref[...])


# --------------------------- pass 2: tiled scoring ---------------------------
def _score_kernel(xn_t_ref, xn_ref, h1_ref, h2_ref, wf1_ref, wf2_ref, bf_ref,
                  out_ref, *, n_valid, n_pad, tile_m, band_w, matmul_dtype):
    i = pl.program_id(0)
    row0 = pl.multiple_of(i * tile_m, tile_m)
    mm = lambda a: a.astype(matmul_dtype)

    xn_tile = xn_t_ref[...]                          # (TM, D) pipelined row tile

    # ---- cosine-similarity row block (dense over all columns, no transpose) --
    a_fsg = lax.dot_general(mm(xn_tile), mm(xn_ref[...]),
                            (((1,), (1,)), ((), ())),
                            preferred_element_type=jnp.float32)       # (TM, Npad)
    agg1 = jnp.dot(mm(a_fsg), mm(h1_ref[...]),
                   preferred_element_type=jnp.float32)                # (TM, D)

    # ---- band-limited temporal-relation block ---------------------------------
    if band_w < n_pad:                               # static: banded path
        w0 = jnp.minimum(jnp.maximum(row0 - _TRG_BAND, 0), n_pad - band_w)
        w0 = pl.multiple_of(w0, 8)
        h2_win = h2_ref[pl.ds(w0, band_w), :]                         # (BW, D)
    else:                                            # small N: full width
        w0 = 0
        h2_win = h2_ref[...]
    ri = lax.broadcasted_iota(jnp.int32, (tile_m, band_w), 0) + row0
    ci = lax.broadcasted_iota(jnp.int32, (tile_m, band_w), 1) + w0
    a_trg = jnp.exp(-jnp.abs((ri - ci).astype(jnp.float32)))          # (TM, BW)
    if n_valid != n_pad:
        a_trg = jnp.where(ci < n_valid, a_trg, 0.0)  # kill padded columns
    agg2 = jnp.dot(mm(a_trg), mm(h2_win),
                   preferred_element_type=jnp.float32)                # (TM, D)

    # ---- expmap0 (c = 1) -------------------------------------------------------
    def expmap0(v):
        ssq_v = jnp.sum(v * v, axis=-1, keepdims=True)
        inv_v = lax.rsqrt(ssq_v + _EPS_SQ)
        nv = jnp.minimum(ssq_v * inv_v, _TANH_CLAMP)
        return jnp.tanh(nv) * (v * inv_v)

    x_fsg = expmap0(agg1)
    x_trg = expmap0(agg2)

    # ---- fc over concat([x_fsg, x_trg]) + sigmoid -> lane-dense (1, TM) row ----
    logit = (lax.dot_general(wf1_ref[...], x_fsg, (((1,), (1,)), ((), ())),
                             preferred_element_type=jnp.float32)
             + lax.dot_general(wf2_ref[...], x_trg, (((1,), (1,)), ((), ())),
                               preferred_element_type=jnp.float32)
             + bf_ref[0, 0])                                          # (1, TM)
    out_ref[...] = jax.nn.sigmoid(logit)


def hyperbolic_video_anomaly_detector(x, params, *, matmul_dtype=jnp.bfloat16,
                                      tile_m=None):
    """x: (N, D) float32 segment features. Returns anomaly scores (N,)."""
    N, D = x.shape
    w1, b1, w2, b2, wf, bf = (params[k] for k in ("w1", "b1", "w2", "b2", "wf", "bf"))
    b1r = b1.reshape(1, D).astype(jnp.float32)
    b2r = b2.reshape(1, D).astype(jnp.float32)
    wf1 = wf[:, :D]                                   # (1, D)  multiplies x_fsg
    wf2 = wf[:, D:]                                   # (1, D)  multiplies x_trg
    bfr = bf.reshape(1, 1).astype(jnp.float32)

    # Row tiling: xn/h1/h2 stay resident; per-step intermediates are (TM, Npad)
    # for a_fsg and (TM, band) for a_trg.
    if tile_m is None:
        if N <= 128:
            tile_m = _round_up(N, 8)
        elif N <= 4096:
            tile_m = 128
        else:
            tile_m = 256      # fine on v5e/v6e (128 MiB VMEM); see TODO for v7x
    tm = tile_m
    n_pad = _round_up(N, tm)
    if n_pad != N:
        x = jnp.pad(x, ((0, n_pad - N), (0, 0)))
    grid = (n_pad // tm,)

    # ---- pass 1: preamble (runs once, not once per score-row tile) -----------
    xn, h1, h2 = pl.pallas_call(
        functools.partial(_preamble_kernel, matmul_dtype=matmul_dtype),
        out_shape=(jax.ShapeDtypeStruct((n_pad, D), jnp.float32),) * 3,
        grid=grid,
        in_specs=[
            pl.BlockSpec((tm, D), lambda i: (i, 0)),     # X row tile
            pl.BlockSpec((D, D), lambda i: (0, 0)),      # W1
            pl.BlockSpec((1, D), lambda i: (0, 0)),      # b1
            pl.BlockSpec((D, D), lambda i: (0, 0)),      # W2
            pl.BlockSpec((1, D), lambda i: (0, 0)),      # b2
        ],
        out_specs=[pl.BlockSpec((tm, D), lambda i: (i, 0))] * 3,
        compiler_params=pltpu.CompilerParams(dimension_semantics=("parallel",)),
    )(x, w1, b1r, w2, b2r)

    # ---- pass 2: tiled scoring kernel ------------------------------------------
    band_w = min(tm + 2 * _TRG_BAND, n_pad)           # multiple of 128 when banded
    # TODO(synk): for very large N (>= ~20-30k segments) on v7x (64 MiB VMEM),
    # add a K-tiling grid axis ("arbitrary") over Npad for a_fsg/agg1 with a VMEM
    # accumulator instead of materializing the full (TM, Npad) a_fsg block.

    kernel = functools.partial(_score_kernel, n_valid=N, n_pad=n_pad, tile_m=tm,
                               band_w=band_w, matmul_dtype=matmul_dtype)

    mxu_bytes = jnp.finfo(matmul_dtype).bits // 8
    vmem_est = (2 * 3 * n_pad * D * 4                 # resident xn/h1/h2 (buffered)
                + 2 * tm * D * 4                      # double-buffered row tile
                + tm * n_pad * (4 + mxu_bytes)        # a_fsg (f32 + MXU cast copy)
                + tm * band_w * (4 + mxu_bytes)       # a_trg
                + 16 * tm * D * 4                     # agg / expmap0 temporaries
                + (2 << 20))
    try:
        vmem_cap = pltpu.get_tpu_info().vmem_capacity_bytes
    except Exception:                                 # conservative (v7x) fallback
        vmem_cap = 64 << 20
    vmem_limit = int(min(max(2 * vmem_est, 32 << 20), (vmem_cap * 3) // 4))

    cost = pl.CostEstimate(
        flops=int(4 * n_pad * n_pad * D + 2 * n_pad * band_w * D + 8 * n_pad * D),
        transcendentals=int(n_pad * band_w + 4 * n_pad),
        bytes_accessed=int(4 * (4 * n_pad * D + n_pad)),
    )

    out = pl.pallas_call(
        kernel,
        out_shape=jax.ShapeDtypeStruct((1, n_pad), jnp.float32),
        grid=grid,
        in_specs=[
            pl.BlockSpec((tm, D), lambda i: (i, 0)),            # xn row tile (pipelined)
            pl.BlockSpec((n_pad, D), lambda i: (0, 0)),         # xn (resident)
            pl.BlockSpec((n_pad, D), lambda i: (0, 0)),         # h1 (resident)
            pl.BlockSpec((n_pad, D), lambda i: (0, 0)),         # h2 (resident)
            pl.BlockSpec((1, D), lambda i: (0, 0)),             # wf[:, :D]
            pl.BlockSpec((1, D), lambda i: (0, 0)),             # wf[:, D:]
            pl.BlockSpec(memory_space=pltpu.MemorySpace.SMEM),  # fc bias scalar
        ],
        out_specs=pl.BlockSpec((1, tm), lambda i: (0, i)),      # lane-dense scores
        compiler_params=pltpu.CompilerParams(
            dimension_semantics=("parallel",),
            vmem_limit_bytes=vmem_limit),
        cost_estimate=cost,
    )(xn, xn, h1, h2, wf1, wf2, bfr)
    return out[0, :N]


# ----------------------------- pure-JAX reference ----------------------------
def _reference(x, params):
    eps = 1e-15

    def logmap0(v):
        n = jnp.maximum(jnp.linalg.norm(v, axis=-1, keepdims=True), eps)
        return _artanh(n) * v / n

    def expmap0(v):
        n = jnp.maximum(jnp.linalg.norm(v, axis=-1, keepdims=True), eps)
        return jnp.tanh(n) * v / n

    n_seg = x.shape[0]
    idx = jnp.arange(n_seg, dtype=jnp.float32)
    a_trg = jnp.exp(-jnp.abs(idx[:, None] - idx[None, :]))

    rn = jnp.maximum(jnp.linalg.norm(x, axis=-1, keepdims=True), 1e-8)
    xn = x / rn
    a_fsg = xn @ xn.T
    xt = logmap0(x)
    x_fsg = expmap0(a_fsg @ (xt @ params["w1"] + params["b1"]))
    x_trg = expmap0(a_trg @ (xt @ params["w2"] + params["b2"]))
    cat = jnp.concatenate([x_fsg, x_trg], axis=-1)
    return jax.nn.sigmoid(cat @ params["wf"].T + params["bf"])[:, 0]


def _make_params(key, dim):
    ks = jax.random.split(key, 6)
    bound = 1.0 / jnp.sqrt(dim)
    bound2 = 1.0 / jnp.sqrt(2 * dim)
    u = lambda k, s, b: jax.random.uniform(k, s, jnp.float32, -b, b)
    return dict(
        w1=u(ks[0], (dim, dim), bound),        # stored as (in, out)
        b1=u(ks[1], (dim,), bound),
        w2=u(ks[2], (dim, dim), bound),
        b2=u(ks[3], (dim,), bound),
        wf=u(ks[4], (1, 2 * dim), bound2),     # PyTorch fc weight layout (out, in)
        bf=u(ks[5], (1,), bound2),
    )


if __name__ == "__main__":
    D = 32
    key = jax.random.PRNGKey(0)
    kp, _ = jax.random.split(key)
    params = _make_params(kp, D)

    def run(n, seed, dtype):
        xx = (jax.random.normal(jax.random.PRNGKey(seed), (n, D), jnp.float32)
              * (0.5 / jnp.sqrt(D)))
        s = jax.block_until_ready(
            hyperbolic_video_anomaly_detector(xx, params, matmul_dtype=dtype))
        return xx, s

    # 1) small single tile: exact f32 path + default-style bf16 MXU path
    x1, s1 = run(16, 0, jnp.float32)
    r1 = _reference(x1, params)
    assert s1.shape == (16,)
    assert jnp.allclose(s1, r1, atol=1e-5, rtol=1e-5), (s1, r1)
    _, s1b = run(16, 0, jnp.bfloat16)
    assert jnp.allclose(s1b, r1, atol=5e-2, rtol=5e-2), (s1b, r1)

    # 2) non-multiple-of-8 N -> in-kernel padding + padded-column masking
    x2, s2 = run(13, 1, jnp.float32)
    r2 = _reference(x2, params)
    assert s2.shape == (13,)
    assert jnp.allclose(s2, r2, atol=1e-5, rtol=1e-5), (s2, r2)

    # 3) multi-tile grid, dense A_trg path (window == n_pad)
    x3, s3 = run(200, 2, jnp.float32)
    r3 = _reference(x3, params)
    assert s3.shape == (200,)
    assert jnp.allclose(s3, r3, atol=1e-4, rtol=1e-4), (s3, r3)

    # 4) multi-tile grid, band-limited A_trg path (window < n_pad)
    x4, s4 = run(400, 3, jnp.float32)
    r4 = _reference(x4, params)
    assert s4.shape == (400,)
    assert jnp.allclose(s4, r4, atol=1e-4, rtol=1e-4), (s4, r4)
    _, s4b = run(400, 3, jnp.bfloat16)     # default bf16 MXU path, banded
    assert jnp.allclose(s4b, r4, atol=5e-2, rtol=5e-2), (s4b, r4)

    print("KERNEL_OK")
</pallas_src>

<mosaic_0001>
module attributes {stable_mosaic.version = 11 : i64} {
  func.func @_preamble_kernel(%arg0: i32, %arg1: memref<16x32xf32, #tpu.memory_space<vmem>>, %arg2: memref<32x32xf32, #tpu.memory_space<vmem>>, %arg3: memref<1x32xf32, #tpu.memory_space<vmem>>, %arg4: memref<32x32xf32, #tpu.memory_space<vmem>>, %arg5: memref<1x32xf32, #tpu.memory_space<vmem>>, %arg6: memref<16x32xf32, #tpu.memory_space<vmem>>, %arg7: memref<16x32xf32, #tpu.memory_space<vmem>>, %arg8: memref<16x32xf32, #tpu.memory_space<vmem>>) attributes {dimension_semantics = [#tpu.dimension_semantics<parallel>], iteration_bounds = array<i64: 1>, scalar_prefetch = 0 : i64, scratch_operands = 0 : i64, tpu.core_type = #tpu.core_type<tc>, window_params = [{transform_indices = @transform_0, window_bounds = array<i64: 16, 32>}, {pipeline_mode = #tpu.pipeline_mode<synchronous>, transform_indices = @transform_1, window_bounds = array<i64: 32, 32>}, {pipeline_mode = #tpu.pipeline_mode<synchronous>, transform_indices = @transform_2, window_bounds = array<i64: 1, 32>}, {pipeline_mode = #tpu.pipeline_mode<synchronous>, transform_indices = @transform_3, window_bounds = array<i64: 32, 32>}, {pipeline_mode = #tpu.pipeline_mode<synchronous>, transform_indices = @transform_4, window_bounds = array<i64: 1, 32>}, {transform_indices = @transform_5, window_bounds = array<i64: 16, 32>}, {transform_indices = @transform_6, window_bounds = array<i64: 16, 32>}, {transform_indices = @transform_7, window_bounds = array<i64: 16, 32>}]} {
    %c0 = arith.constant 0 : index
    %c0_0 = arith.constant 0 : index
    %0 = vector.load %arg1[%c0, %c0_0] : memref<16x32xf32, #tpu.memory_space<vmem>>, vector<16x32xf32>
    %1 = arith.mulf %0, %0 : vector<16x32xf32>
    %cst = arith.constant dense<0.000000e+00> : vector<16xf32>
    %2 = vector.multi_reduction <add>, %1, %cst [1] : vector<16x32xf32> to vector<16xf32>
    %3 = vector.shape_cast %2 : vector<16xf32> to vector<16x1xf32>
    %cst_1 = arith.constant 1.000000e-30 : f32
    %4 = vector.broadcast %cst_1 : f32 to vector<16x1xf32>
    %5 = arith.addf %3, %4 : vector<16x1xf32>
    %6 = math.rsqrt %5 : vector<16x1xf32>
    %7 = vector.broadcast %6 : vector<16x1xf32> to vector<16x32xf32>
    %8 = arith.mulf %0, %7 : vector<16x32xf32>
    %9 = arith.mulf %3, %6 : vector<16x1xf32>
    %cst_2 = arith.constant -0.999998986 : f32
    %cst_3 = arith.constant 0.999998986 : f32
    %10 = vector.broadcast %cst_2 : f32 to vector<16x1xf32>
    %11 = arith.maximumf %10, %9 : vector<16x1xf32>
    %12 = vector.broadcast %cst_3 : f32 to vector<16x1xf32>
    %13 = arith.minimumf %12, %11 : vector<16x1xf32>
    %cst_4 = arith.constant 1.000000e+00 : f32
    %14 = vector.broadcast %cst_4 : f32 to vector<16x1xf32>
    %15 = arith.addf %14, %13 : vector<16x1xf32>
    %cst_5 = arith.constant 1.000000e+00 : f32
    %16 = vector.broadcast %cst_5 : f32 to vector<16x1xf32>
    %17 = arith.subf %16, %13 : vector<16x1xf32>
    %18 = arith.divf %15, %17 : vector<16x1xf32>
    %19 = math.log %18 : vector<16x1xf32>
    %cst_6 = arith.constant 5.000000e-01 : f32
    %20 = vector.broadcast %cst_6 : f32 to vector<16x1xf32>
    %21 = arith.mulf %20, %19 : vector<16x1xf32>
    %22 = vector.broadcast %21 : vector<16x1xf32> to vector<16x32xf32>
    %23 = arith.mulf %22, %8 : vector<16x32xf32>
    %c0_7 = arith.constant 0 : index
    %c0_8 = arith.constant 0 : index
    %24 = vector.load %arg6[%c0_7, %c0_8] : memref<16x32xf32, #tpu.memory_space<vmem>>, vector<16x32xf32>
    tpu.vector_store %arg6[%c0_7, %c0_8], %8 {strides = array<i32>} : memref<16x32xf32, #tpu.memory_space<vmem>>, vector<16x32xf32>,
    %c0_9 = arith.constant 0 : index
    %c0_10 = arith.constant 0 : index
    %25 = vector.load %arg2[%c0_9, %c0_10] : memref<32x32xf32, #tpu.memory_space<vmem>>, vector<32x32xf32>
    %cst_11 = arith.constant dense<0.000000e+00> : vector<16x32xf32>
    %26 = tpu.matmul %23, %25, %cst_11 {dimension_numbers = #tpu.dot_dimension_numbers<[1], [0], [0], [1], [0, 0, 1, 1], [], []>} : vector<16x32xf32>, vector<32x32xf32>, vector<16x32xf32> -> vector<16x32xf32>
    %c0_12 = arith.constant 0 : index
    %c0_13 = arith.constant 0 : index
    %27 = vector.load %arg3[%c0_12, %c0_13] : memref<1x32xf32, #tpu.memory_space<vmem>>, vector<1x32xf32>
    %28 = vector.broadcast %27 : vector<1x32xf32> to vector<16x32xf32>
    %29 = arith.addf %26, %28 : vector<16x32xf32>
    %c0_14 = arith.constant 0 : index
    %c0_15 = arith.constant 0 : index
    %30 = vector.load %arg7[%c0_14, %c0_15] : memref<16x32xf32, #tpu.memory_space<vmem>>, vector<16x32xf32>
    tpu.vector_store %arg7[%c0_14, %c0_15], %29 {strides = array<i32>} : memref<16x32xf32, #tpu.memory_space<vmem>>, vector<16x32xf32>,
    %c0_16 = arith.constant 0 : index
    %c0_17 = arith.constant 0 : index
    %31 = vector.load %arg4[%c0_16, %c0_17] : memref<32x32xf32, #tpu.memory_space<vmem>>, vector<32x32xf32>
    %cst_18 = arith.constant dense<0.000000e+00> : vector<16x32xf32>
    %32 = tpu.matmul %23, %31, %cst_18 {dimension_numbers = #tpu.dot_dimension_numbers<[1], [0], [0], [1], [0, 0, 1, 1], [], []>} : vector<16x32xf32>, vector<32x32xf32>, vector<16x32xf32> -> vector<16x32xf32>
    %c0_19 = arith.constant 0 : index
    %c0_20 = arith.constant 0 : index
    %33 = vector.load %arg5[%c0_19, %c0_20] : memref<1x32xf32, #tpu.memory_space<vmem>>, vector<1x32xf32>
    %34 = vector.broadcast %33 : vector<1x32xf32> to vector<16x32xf32>
    %35 = arith.addf %32, %34 : vector<16x32xf32>
    %c0_21 = arith.constant 0 : index
    %c0_22 = arith.constant 0 : index
    %36 = vector.load %arg8[%c0_21, %c0_22] : memref<16x32xf32, #tpu.memory_space<vmem>>, vector<16x32xf32>
    tpu.vector_store %arg8[%c0_21, %c0_22], %35 {strides = array<i32>} : memref<16x32xf32, #tpu.memory_space<vmem>>, vector<16x32xf32>,
    return
  }
  func.func @transform_0(%arg0: i32) -> (i32, i32) {
    %c0_i32 = arith.constant 0 : i32
    %c0_i32_0 = arith.constant 0 : i32
    return %arg0, %c0_i32 : i32, i32
  }
  func.func @transform_1(%arg0: i32) -> (i32, i32) {
    %c0_i32 = arith.constant 0 : i32
    %c0_i32_0 = arith.constant 0 : i32
    %c0_i32_1 = arith.constant 0 : i32
    return %c0_i32, %c0_i32_0 : i32, i32
  }
  func.func @transform_2(%arg0: i32) -> (i32, i32) {
    %c0_i32 = arith.constant 0 : i32
    %c0_i32_0 = arith.constant 0 : i32
    %c0_i32_1 = arith.constant 0 : i32
    return %c0_i32, %c0_i32_0 : i32, i32
  }
  func.func @transform_3(%arg0: i32) -> (i32, i32) {
    %c0_i32 = arith.constant 0 : i32
    %c0_i32_0 = arith.constant 0 : i32
    %c0_i32_1 = arith.constant 0 : i32
    return %c0_i32, %c0_i32_0 : i32, i32
  }
  func.func @transform_4(%arg0: i32) -> (i32, i32) {
    %c0_i32 = arith.constant 0 : i32
    %c0_i32_0 = arith.constant 0 : i32
    %c0_i32_1 = arith.constant 0 : i32
    return %c0_i32, %c0_i32_0 : i32, i32
  }
  func.func @transform_5(%arg0: i32) -> (i32, i32) {
    %c0_i32 = arith.constant 0 : i32
    %c0_i32_0 = arith.constant 0 : i32
    return %arg0, %c0_i32 : i32, i32
  }
  func.func @transform_6(%arg0: i32) -> (i32, i32) {
    %c0_i32 = arith.constant 0 : i32
    %c0_i32_0 = arith.constant 0 : i32
    return %arg0, %c0_i32 : i32, i32
  }
  func.func @transform_7(%arg0: i32) -> (i32, i32) {
    %c0_i32 = arith.constant 0 : i32
    %c0_i32_0 = arith.constant 0 : i32
    return %arg0, %c0_i32 : i32, i32
  }
}

</mosaic_0001>

<bundles_post_ra>
// kernel: tpu_custom_call.1
= control target key start
LH: loop header
LB: loop body
LE: loop exit
PB: predicated region body
PF: predicated region fallthrough
CT: control target
= control target key end

     0   :  { %13 = vsyncpa [#allocation3], 0  ;;  %s726_s0 = inlined_call_operand.hbm [shape: f32[16,32], index: 0, kind: input, shape index: {}]   ;;  %s727_s1 = inlined_call_operand.hbm [shape: f32[32,32], index: 1, kind: input, shape index: {}]   ;;  %s728_s2 = inlined_call_operand.vmem [shape: f32[1,32], index: 2, kind: input, shape index: {}]   ;;  %s729_s3 = inlined_call_operand.hbm [shape: f32[32,32], index: 3, kind: input, shape index: {}]   ;;  %s730_s4 = inlined_call_operand.vmem [shape: f32[1,32], index: 4, kind: input, shape index: {}]   ;;  %s731_s5 = inlined_call_operand.hbm [shape: f32[16,32], index: 5, kind: output, shape index: {0}]   ;;  %s732_s6 = inlined_call_operand.hbm [shape: f32[16,32], index: 6, kind: output, shape index: {1}]   ;;  %s733_s7 = inlined_call_operand.hbm [shape: f32[16,32], index: 7, kind: output, shape index: {2}]  }
   0x1   :  { %14 = vsyncpa [#allocation6], 0 }
   0x2   :  { %15 = vsyncpa [#allocation4], 0 }
   0x3   :  { %16 = vsyncpa [#allocation10], 0  ;;  %s556_s24 = smov [#allocation5]   ;;  %s557_s26 = smov [#allocation2]  }
   0x4   :  { %s34_s25 = sshll.u32 %s556_s24, 4  ;;  %s22_s27 = sshll.u32 %s557_s26, 4  ;;  %s35_s25 = int_to_ptr.vmem [resolvable:$true] %s34_s25  ;;  %s604_s27 = int_to_ptr.vmem [resolvable:$true] %s22_s27 }
   0x5   :  { %s416_s30 = scalar_lea.hbm %s727_s1, 512 }
   0x6   :  { %p417_p0 = scmp.ne.s32.totalorder %s727_s1, %s416_s30  ;;  %p420_p1 = scmp.lt.u32.totalorder %s416_s30, %s727_s1 }
   0x8   :  { %p422_p2 = pnand %p420_p1, %p417_p0 }
   0xa   :  { %425 = shalt.err (!%p422_p2)
}
   0xb   :  { %s426_s12 = scalar_lea.vmem %s35_s25, 512  ;;  %p431_p4 = scmp.lt.s32.totalorder %s35_s25, %s35_s25 }
   0xc   :  { %p427_p3 = scmp.ne.s32.totalorder %s35_s25, %s426_s12  ;;  %p432_p5 = scmp.lt.s32.totalorder %s426_s12, %s426_s12 }
   0xe   :  { %p433_p6 = por %p432_p5, %p431_p4 }
  0x10   :  { %p434_p7 = pnand %p433_p6, %p427_p3 }
  0x12   :  { %437 = shalt.err (!%p434_p7)
}
  0x13   :  { %s558_s13 = smov 128   ;;  %s559_s14 = smov 8  }
  0x14   :  { %40 = dma.hbm_to_vmem [thread:$0]  %s727_s1, 512, %s35_s25, [#allocation6], %s558_s13, %s558_s13, %s559_s14  }
  0x15   :  { %s438_s19 = scalar_lea.hbm %s726_s0, 256 }
  0x16   :  { %p439_p8 = scmp.ne.s32.totalorder %s726_s0, %s438_s19  ;;  %p442_p9 = scmp.lt.u32.totalorder %s438_s19, %s726_s0 }
  0x18   :  { %p444_p10 = pnand %p442_p9, %p439_p8 }
  0x1a   :  { %447 = shalt.err (!%p444_p10)
}
  0x1b   :  { %s448_s24 = scalar_lea.vmem %s604_s27, 256  ;;  %p453_p12 = scmp.lt.s32.totalorder %s604_s27, %s604_s27 }
  0x1c   :  { %p449_p11 = scmp.ne.s32.totalorder %s604_s27, %s448_s24  ;;  %p454_p13 = scmp.lt.s32.totalorder %s448_s24, %s448_s24 }
  0x1e   :  { %p455_p0 = por %p454_p13, %p453_p12 }
  0x20   :  { %p456_p1 = pnand %p455_p0, %p449_p11 }
  0x22   :  { %459 = shalt.err (!%p456_p1)
}
  0x23   :  { %28 = dma.hbm_to_vmem [thread:$0]  %s726_s0, 256, %s604_s27, [#allocation3], %s558_s13, %s558_s13, %s559_s14  }
  0x24   :  { %s560_s26 = smov [#allocation7]   ;;  %s460_s8 = scalar_lea.hbm %s729_s3, 512 }
  0x25   :  { %s48_s28 = sshll.u32 %s560_s26, 4  ;;  %p461_p2 = scmp.ne.s32.totalorder %s729_s3, %s460_s8  ;;  %s49_s28 = int_to_ptr.vmem [resolvable:$true] %s48_s28 }
  0x26   :  { %p464_p3 = scmp.lt.u32.totalorder %s460_s8, %s729_s3 }
  0x28   :  { %p466_p4 = pnand %p464_p3, %p461_p2 }
  0x2a   :  { %469 = shalt.err (!%p466_p4)
}
  0x2b   :  { %s470_s15 = scalar_lea.vmem %s49_s28, 512  ;;  %p475_p6 = scmp.lt.s32.totalorder %s49_s28, %s49_s28 }
  0x2c   :  { %p471_p5 = scmp.ne.s32.totalorder %s49_s28, %s470_s15  ;;  %p476_p7 = scmp.lt.s32.totalorder %s470_s15, %s470_s15 }
  0x2e   :  { %p477_p8 = por %p476_p7, %p475_p6 }
  0x30   :  { %p478_p9 = pnand %p477_p8, %p471_p5 }
  0x32   :  { %481 = shalt.err (!%p478_p9)
}
  0x33   :  { %54 = dma.hbm_to_vmem [thread:$0]  %s729_s3, 512, %s49_s28, [#allocation6], %s558_s13, %s558_s13, %s559_s14  }
  0x34   :  { %548 = dma.done.wait [#allocation3], 256  }
  0x35   :  { %549 = vsyncadd [#allocation3], 4294967040 }
  0x36   :  { %550 = dma.done.wait [#allocation6], 1024  }
  0x37   :  { %551 = vsyncadd [#allocation6], 4294966272  ;;  %v66_v0 = vld [vmem:[#allocation2] sm:$0xff]  ;;  %vm70_vm0 = vcmask 261120   ;;  %v67_v1 = vld [vmem:[#allocation2 + $0x8] sm:$0xff]  ;;  %s561_s3 = smov [#allocation8]  }
  0x38   :  { %v68_v2 = vmul.f32 %v66_v0, %v66_v0  ;;  %v69_v3 = vmul.f32 %v67_v1, %v67_v1  ;;  %v107_v6 = vld [vmem:[#allocation5] sm:$0xff]  ;;  %v108_v7 = vld [vmem:[#allocation5 + $0x8] sm:$0xff]  ;;  %v109_v12 = vld [vmem:[#allocation5 + $0x10] sm:$0xff]  ;;  %s294_s16 = sshll.u32 %s561_s3, 4  ;;  %s295_s16 = int_to_ptr.vmem [resolvable:$true] %s294_s16 }
  0x39   :  { %v201_v8 = vld [vmem:[#allocation7] sm:$0xff]  ;;  %v380_v9 = vpack.c.bf16 %v108_v7, %v107_v6  ;;  %v202_v10 = vld [vmem:[#allocation7 + $0x8] sm:$0xff]  ;;  %v110_v13 = vld [vmem:[#allocation5 + $0x18] sm:$0xff]  ;;  %s482_s17 = scalar_lea.vmem %s295_s16, 256  ;;  %p487_p11 = scmp.lt.s32.totalorder %s295_s16, %s295_s16 }
  0x3a   :  { %v71_v4 = vsel %vm70_vm0, %v68_v2, 0.0  ;;  %v74_v5 = vsel %vm70_vm0, %v69_v3, 0.0  ;;  %v388_v11 = vpack.c.bf16 %v202_v10, %v201_v8  ;;  %v203_v14 = vld [vmem:[#allocation7 + $0x10] sm:$0xff]  ;;  %v384_v15 = vpack.c.bf16 %v110_v13, %v109_v12  ;;  %v204_v16 = vld [vmem:[#allocation7 + $0x18] sm:$0xff]  ;;  %p483_p10 = scmp.ne.s32.totalorder %s295_s16, %s482_s17  ;;  %p488_p12 = scmp.lt.s32.totalorder %s482_s17, %s482_s17 }
  0x3b   :  { %72 = vadd.xlane.f32.xlu0 %v71_v4  ;;  %381 = vmatprep.subr.bf16.mxu0 %v380_v9  ;;  %v392_v17 = vpack.c.bf16 %v204_v16, %v203_v14 }
  0x3c   :  { %389 = vmatprep.subr.bf16.mxu1 %v388_v11  ;;  %383 = vmatpush3.bf16.msra.mxu0 %v380_v9  ;;  %p489_p13 = por %p488_p12, %p487_p11 }
  0x3d   :  { %391 = vmatpush3.bf16.msra.mxu1 %v388_v11  ;;  %385 = vmatprep.subr.bf16.mxu0 %v384_v15 }
  0x3e   :  { %393 = vmatprep.subr.bf16.mxu1 %v392_v17  ;;  %p490_p0 = pnand %p489_p13, %p483_p10 }
  0x3f   :  { %75 = vadd.xlane.f32.xlu0 %v74_v5 }
  0x40   :  { %387 = vmatpush3.bf16.msra.mxu0 %v384_v15 }
  0x41   :  { %395 = vmatpush3.bf16.msra.mxu1 %v392_v17 }
  0xc8   :  { %v73_v18 = vpop.xlane.xlu0 %72 }
  0xc9   :  { %v77_v19 = vadd.f32 1e-30, %v73_v18 }
  0xcb   :  { %404 = vrsqrt.f32 %v77_v19 }
  0xcc   :  { %v76_v20 = vpop.xlane.xlu0 %75 }
  0xcd   :  { %v78_v21 = vadd.f32 1e-30, %v76_v20 }
  0xcf   :  { %406 = vrsqrt.f32 %v78_v21 }
  0xd5   :  { %v405_v22 = vpop.eup %404 }
  0xd6   :  { %v83_v23 = vmul.f32 %v405_v22, %v73_v18  ;;  %v81_v24 = vmul.f32 %v405_v22, %v66_v0 }
  0xd8   :  { %v338_v25 = vclamps-f32 %v83_v23, 0.999999  ;;  %105 = vst.msk [vmem:[#allocation8] sm:$0xff] %vm70_vm0, %v81_v24 }
  0xd9   :  { %v407_v26 = vpop.eup %406 }
  0xda   :  { %v91_v27 = vsub.f32 1.0, %v338_v25  ;;  %v84_v28 = vmul.f32 %v407_v26, %v76_v20  ;;  %v82_v29 = vmul.f32 %v407_v26, %v67_v1  ;;  %v89_v32 = vadd.f32 1.0, %v338_v25 }
  0xdc   :  { %408 = vrcp.f32 %v91_v27  ;;  %v339_v30 = vclamps-f32 %v84_v28, 0.999999  ;;  %106 = vst.msk [vmem:[#allocation8 + $0x8] sm:$0xff] %vm70_vm0, %v82_v29 }
  0xde   :  { %v92_v31 = vsub.f32 1.0, %v339_v30  ;;  %v90_v35 = vadd.f32 1.0, %v339_v30 }
  0xe0   :  { %410 = vrcp.f32 %v92_v31 }
  0xe6   :  { %v409_v33 = vpop.eup %408 }
  0xe7   :  { %v94_v34 = vmul.f32 %v409_v33, %v89_v32 }
  0xe9   :  { %412 = vlog2.f32 %v94_v34 }
  0xea   :  { %v411_v36 = vpop.eup %410 }
  0xeb   :  { %v96_v37 = vmul.f32 %v411_v36, %v90_v35 }
  0xed   :  { %414 = vlog2.f32 %v96_v37 }
  0xf3   :  { %v413_v38 = vpop.eup %412 }
  0xf4   :  { %v98_v39 = vmul.f32 0.6931472, %v413_v38 }
  0xf6   :  { %v101_v40 = vmul.f32 0.5, %v98_v39 }
  0xf7   :  { %v415_v41 = vpop.eup %414 }
  0xf8   :  { %v100_v42 = vmul.f32 0.6931472, %v415_v41  ;;  %v103_v43 = vmul.f32 %v101_v40, %v81_v24 }
  0xfa   :  { %v102_v44 = vmul.f32 0.5, %v100_v42  ;;  %366 = vmatprep.mubr.msk.f32.mxu0 %vm70_vm0, %v103_v43  ;;  %377 = vmatprep.mubr.msk.f32.mxu1 %vm70_vm0, %v103_v43 }
  0xfc   :  { %v104_v45 = vmul.f32 %v102_v44, %v82_v29 }
  0xfe   :  { %367 = vmatmul.mubr.msk.f32.vlgmr.msra.gmra.mrb[0].mxu0 %vm70_vm0, %v104_v45  ;;  %378 = vmatmul.mubr.msk.f32.vlgmr.msra.gmra.mrb[0].mxu1 %vm70_vm0, %v104_v45 }
  0xff   :  { %493 = shalt.err (!%p490_p0)
}
 0x100   :  { %s494_s20 = scalar_lea.hbm %s731_s5, 256 }
 0x101   :  { %p495_p1 = scmp.ne.s32.totalorder %s731_s5, %s494_s20  ;;  %p498_p2 = scmp.lt.u32.totalorder %s494_s20, %s731_s5 }
 0x103   :  { %p500_p3 = pnand %p498_p2, %p495_p1 }
 0x105   :  { %503 = shalt.err (!%p500_p3)
}
 0x106   :  { %300 = dma.vmem_to_hbm [thread:$0]  %s295_s16, 256, %s731_s5, [#allocation4], %s558_s13, %s558_s13, %s559_s14  }
 0x107   :  { %v340_v46 = vld [vmem:[%s728_s2] ss:$0 sm:$0xff]  ;;  %s562_s8 = smov [#allocation9]   ;;  %s563_s10 = smov [#allocation11]  }
 0x108   :  { %v343_v47 = vld [vmem:[%s730_s4] ss:$0 sm:$0xff]  ;;  %s306_s9 = sshll.u32 %s562_s8, 4  ;;  %s318_s11 = sshll.u32 %s563_s10, 4  ;;  %s307_s9 = int_to_ptr.vmem [resolvable:$true] %s306_s9  ;;  %s687_s11 = int_to_ptr.vmem [resolvable:$true] %s318_s11 }
 0x109   :  { %s504_s2 = scalar_lea.vmem %s307_s9, 256  ;;  %p509_p5 = scmp.lt.s32.totalorder %s307_s9, %s307_s9 }
 0x10a   :  { %p505_p4 = scmp.ne.s32.totalorder %s307_s9, %s504_s2  ;;  %p510_p6 = scmp.lt.s32.totalorder %s504_s2, %s504_s2 }
 0x10c   :  { %p511_p7 = por %p510_p6, %p509_p5 }
 0x10e   :  { %p512_p8 = pnand %p511_p7, %p505_p4 }
 0x1d1   :  { %v368_v48 = vpop.f32.mrb[0].mxu0  ;;  %v379_v49 = vpop.f32.mrb[0].mxu1 }
 0x1d2   :  { %v196_v50 = vadd.f32 %v368_v48, %v340_v46  ;;  %v284_v51 = vadd.f32 %v379_v49, %v343_v47  ;;  %v190_v52 = vpop.f32.mrb[1].mxu0  ;;  %v278_v53 = vpop.f32.mrb[1].mxu1 }
 0x1d3   :  { %v191_v54 = vadd.f32 %v340_v46, %v190_v52  ;;  %v279_v55 = vadd.f32 %v343_v47, %v278_v53 }
 0x1d4   :  { %200 = vst.msk [vmem:[#allocation9 + $0x8] sm:$0xff] %vm70_vm0, %v196_v50  ;;  %288 = vst.msk [vmem:[#allocation11 + $0x8] sm:$0xff] %vm70_vm0, %v284_v51 }
 0x1d5   :  { %199 = vst.msk [vmem:[#allocation9] sm:$0xff] %vm70_vm0, %v191_v54  ;;  %287 = vst.msk [vmem:[#allocation11] sm:$0xff] %vm70_vm0, %v279_v55 }
 0x1d6   :  { %515 = shalt.err (!%p512_p8)
}
 0x1d7   :  { %s516_s12 = scalar_lea.hbm %s732_s6, 256 }
 0x1d8   :  { %p517_p9 = scmp.ne.s32.totalorder %s732_s6, %s516_s12  ;;  %p520_p10 = scmp.lt.u32.totalorder %s516_s12, %s732_s6 }
 0x1da   :  { %p522_p11 = pnand %p520_p10, %p517_p9 }
 0x1dc   :  { %525 = shalt.err (!%p522_p11)
}
 0x1dd   :  { %312 = dma.vmem_to_hbm [thread:$0]  %s307_s9, 256, %s732_s6, [#allocation10], %s558_s13, %s558_s13, %s559_s14  }
 0x1de   :  { %s526_s18 = scalar_lea.vmem %s687_s11, 256  ;;  %p531_p13 = scmp.lt.s32.totalorder %s687_s11, %s687_s11 }
 0x1df   :  { %p527_p12 = scmp.ne.s32.totalorder %s687_s11, %s526_s18  ;;  %p532_p0 = scmp.lt.s32.totalorder %s526_s18, %s526_s18 }
 0x1e1   :  { %p533_p1 = por %p532_p0, %p531_p13 }
 0x1e3   :  { %p534_p2 = pnand %p533_p1, %p527_p12 }
 0x1e5   :  { %537 = shalt.err (!%p534_p2)
}
 0x1e6   :  { %s538_s21 = scalar_lea.hbm %s733_s7, 256 }
 0x1e7   :  { %p539_p3 = scmp.ne.s32.totalorder %s733_s7, %s538_s21  ;;  %p542_p4 = scmp.lt.u32.totalorder %s538_s21, %s733_s7 }
 0x1e9   :  { %p544_p5 = pnand %p542_p4, %p539_p3 }
 0x1eb   :  { %547 = shalt.err (!%p544_p5)
}
 0x1ec   :  { %324 = dma.vmem_to_hbm [thread:$0]  %s687_s11, 256, %s733_s7, [#allocation10], %s558_s13, %s558_s13, %s559_s14  }
 0x1ed   :  { %552 = dma.done.wait [#allocation4], 256  }
 0x1ee   :  { %553 = vsyncadd [#allocation4], 4294967040 }
 0x1ef   :  { %554 = dma.done.wait [#allocation10], 512  }
 0x1f0   :  { %555 = vsyncadd [#allocation10], 4294966784 }
 0x1f1   :  { %334 = vsyncpa [#allocation3], 1 }
 0x1f2   :  { %335 = vsyncpa [#allocation6], 1 }
 0x1f3   :  { %336 = vsyncpa [#allocation4], 1 }
 0x1f4   :  { %337 = vsyncpa [#allocation10], 1 }

</bundles_post_ra>
